<compile_context>
chip_gen: v6e
topology: v6e:2x2x1
jax: 0.10.0
libtpu: 0.0.40
codegen_flags: <defaults>
</compile_context>

<pallas_src>
import functools

import numpy as np

import jax
import jax.numpy as jnp
from jax.experimental import pallas as pl
from jax.experimental.pallas import tpu as pltpu

NEG_SLOPE = 0.2  # nn.LeakyReLU(0.2) used by ConvBlock(acti='lrelu')


def _vmem_limit_bytes():
    """Scoped-VMEM budget: generous on v5e/v6e (128 MiB physical), capped on v7x."""
    try:
        cap = int(pltpu.get_tpu_info().vmem_capacity_bytes)
        return min((cap * 3) // 4, 96 * 1024 * 1024)
    except Exception:
        return 32 * 1024 * 1024  # conservative fallback, safe on all generations


def _make_encoder_kernel(layer_meta):
    """Fused kernel: n_convs x (gather matmul -> packed conv matmul -> bias ->
    LeakyReLU) followed by a global max-pool over time, per batch element."""
    n_layers = len(layer_meta)

    def kernel(*refs):
        x_ref = refs[0]
        o_ref = refs[1 + 3 * n_layers]
        rhs_scr = refs[2 + 3 * n_layers]

        act = x_ref[0]  # (C_in, T) f32 — whole time extent of one batch element
        for li, (k, _s, c_in, _c_out, _t_in, t_out) in enumerate(layer_meta):
            g_ref = refs[1 + 3 * li]   # (t_in, K*t_out) constant 0/1 gather matrix
            w_ref = refs[2 + 3 * li]   # (C_out, K*C_in) packed conv weight
            b_ref = refs[3 + 3 * li]   # (C_out, 1) bias

            # Reflect pad + K tap shifts + stride-s decimation in one MXU matmul:
            #   y[ci, kt*t_out + j] == x_pad[ci, j*s + kt]
            y = jnp.dot(act, g_ref[...], preferred_element_type=jnp.float32)

            # Pack the K taps onto sublanes -> folded RHS (K*C_in, t_out) so the
            # conv contraction runs as a single, well-filled matmul.
            for kt in range(k):
                rhs_scr[kt * c_in:(kt + 1) * c_in, :t_out] = (
                    y[:, kt * t_out:(kt + 1) * t_out])
            rhs = rhs_scr[:k * c_in, :t_out]

            out = jnp.dot(w_ref[...], rhs, preferred_element_type=jnp.float32)
            out = out + b_ref[...]                           # broadcast over lanes
            act = jnp.where(out >= 0, out, NEG_SLOPE * out)  # LeakyReLU(0.2)

        # Fused F.max_pool1d(x, x.shape[-1]): one cross-lane reduce, one tiny store.
        o_ref[0] = jnp.max(act, axis=-1, keepdims=True)

    return kernel


class EncoderStyleOriginPallas:
    """Synthetic-config EncoderStyleOrigin with deterministic weights."""

    def __init__(self, channels, kernel_size, stride, n_convs, key):
        self.channels = list(channels)
        self.kernel_size = kernel_size
        self.stride = stride
        self.n_convs = n_convs
        self.params = []
        for i in range(n_convs):
            key, kw, kb = jax.random.split(key, 3)
            c_in, c_out = channels[i], channels[i + 1]
            w = jax.random.normal(kw, (c_out, c_in, kernel_size), jnp.float32) * 0.1
            b = jax.random.normal(kb, (c_out,), jnp.float32) * 0.1
            # Packed weight: w_flat[co, kt*C_in + ci] = w[co, ci, kt] so it contracts
            # directly against the tap-major folded RHS built in-kernel.
            w_flat = jnp.transpose(w, (0, 2, 1)).reshape(c_out, kernel_size * c_in)
            b_col = b.reshape(c_out, 1)
            self.params.append((w_flat, b_col))

    def _plan(self, t):
        """Static per-layer metadata + constant gather matrices for input length t."""
        k, s = self.kernel_size, self.stride
        metas, gathers = [], []
        t_in = t
        for i in range(self.n_convs):
            c_in, c_out = self.channels[i], self.channels[i + 1]
            # TODO(synk): assumes get_conv_pad(k, s) splits the reflect pad as
            # ((k - s)//2, rest); odd (k - s) configs may split the other way round.
            pad_total = k - s
            pad_l = pad_total // 2
            pad_r = pad_total - pad_l
            assert pad_total >= 0 and t_in > max(pad_l, pad_r, 1), (k, s, t_in)
            t_pad = t_in + pad_total
            t_out = (t_pad - k) // s + 1
            # Gather matrix folding reflect pad + tap shift + stride decimation:
            #   (x @ g)[ci, kt*t_out + j] == x_pad[ci, j*s + kt]
            g = np.zeros((t_in, k * t_out), np.float32)
            for kt in range(k):
                for j in range(t_out):
                    p = j * s + kt - pad_l          # position in unpadded coordinates
                    if p < 0:
                        p = -p                      # ReflectionPad1d, left edge
                    elif p >= t_in:
                        p = 2 * (t_in - 1) - p      # ReflectionPad1d, right edge
                    g[p, kt * t_out + j] = 1.0
            metas.append((k, s, c_in, c_out, t_in, t_out))
            gathers.append(g)
            t_in = t_out
        return tuple(metas), gathers

    @functools.partial(jax.jit, static_argnums=0)
    def __call__(self, x):
        x = x.astype(jnp.float32)
        n, c0, t = x.shape
        assert c0 == self.channels[0], (c0, self.channels[0])
        metas, gathers = self._plan(t)
        c_last = self.channels[-1]

        kernel = _make_encoder_kernel(metas)

        operands = [x]
        in_specs = [pl.BlockSpec((1, c0, t), lambda i: (i, 0, 0))]
        flops = 0
        const_bytes = 0
        for (kk, _s, c_in, c_out, t_in, t_out), g, (w_flat, b_col) in zip(
                metas, gathers, self.params):
            g = jnp.asarray(g)
            operands += [g, w_flat, b_col]
            in_specs += [
                pl.BlockSpec(g.shape, lambda i: (0, 0)),
                pl.BlockSpec(w_flat.shape, lambda i: (0, 0)),
                pl.BlockSpec(b_col.shape, lambda i: (0, 0)),
            ]
            flops += 2 * n * (c_in * t_in * kk * t_out + c_out * kk * c_in * t_out)
            const_bytes += 4 * (g.size + w_flat.size + b_col.size)

        max_kc = max(kk * c_in for (kk, _s, c_in, *_rest) in metas)
        max_to = max(t_out for (*_rest, t_out) in metas)

        cost = pl.CostEstimate(
            flops=flops, transcendentals=0,
            bytes_accessed=4 * (x.size + n * c_last) + const_bytes)

        out = pl.pallas_call(
            kernel,
            out_shape=jax.ShapeDtypeStruct((n, c_last, 1), jnp.float32),
            grid=(n,),
            in_specs=in_specs,
            out_specs=pl.BlockSpec((1, c_last, 1), lambda i: (i, 0, 0)),
            scratch_shapes=[pltpu.VMEM((max_kc, max_to), jnp.float32)],
            compiler_params=pltpu.CompilerParams(
                dimension_semantics=("parallel",),
                vmem_limit_bytes=_vmem_limit_bytes(),
            ),
            cost_estimate=cost,
        )(*operands)
        return out  # (N, C_last, 1) float32


if __name__ == "__main__":
    # Synthetic config (small):
    #   style_channel_2d = 4, enc_cl_channels = [_, 8, 16],
    #   enc_cl_kernel_size = 4, enc_cl_stride = 2, enc_cl_down_n = 2
    channels = [4, 8, 16]
    kernel_size = 4
    stride = 2
    n_convs = 2

    key = jax.random.PRNGKey(0)
    key, kx = jax.random.split(key)

    # Input: (batch, style_channel_2d, seq) = (2, 4, 16)   # NCT layout
    x = jax.random.normal(kx, (2, 4, 16), jnp.float32)

    enc = EncoderStyleOriginPallas(channels, kernel_size, stride, n_convs, key)
    out = jax.block_until_ready(enc(x))

    assert out.shape == (2, 16, 1), out.shape
    assert out.dtype == jnp.float32, out.dtype
    print("KERNEL_OK")
</pallas_src>

<mosaic_0001>
module attributes {stable_mosaic.version = 11 : i64} {
  func.func @kernel(%arg0: i32, %arg1: memref<1x4x16xf32, #tpu.memory_space<vmem>>, %arg2: memref<16x32xf32, #tpu.memory_space<vmem>>, %arg3: memref<8x16xf32, #tpu.memory_space<vmem>>, %arg4: memref<8x1xf32, #tpu.memory_space<vmem>>, %arg5: memref<8x16xf32, #tpu.memory_space<vmem>>, %arg6: memref<16x32xf32, #tpu.memory_space<vmem>>, %arg7: memref<16x1xf32, #tpu.memory_space<vmem>>, %arg8: memref<1x16x1xf32, #tpu.memory_space<vmem>>, %arg9: memref<32x8xf32, #tpu.memory_space<vmem>>) attributes {dimension_semantics = [#tpu.dimension_semantics<parallel>], iteration_bounds = array<i64: 2>, scalar_prefetch = 0 : i64, scratch_operands = 1 : i64, tpu.core_type = #tpu.core_type<tc>, window_params = [{transform_indices = @transform_0, window_bounds = array<i64: 1, 4, 16>}, {pipeline_mode = #tpu.pipeline_mode<synchronous>, transform_indices = @transform_1, window_bounds = array<i64: 16, 32>}, {pipeline_mode = #tpu.pipeline_mode<synchronous>, transform_indices = @transform_2, window_bounds = array<i64: 8, 16>}, {pipeline_mode = #tpu.pipeline_mode<synchronous>, transform_indices = @transform_3, window_bounds = array<i64: 8, 1>}, {pipeline_mode = #tpu.pipeline_mode<synchronous>, transform_indices = @transform_4, window_bounds = array<i64: 8, 16>}, {pipeline_mode = #tpu.pipeline_mode<synchronous>, transform_indices = @transform_5, window_bounds = array<i64: 16, 32>}, {pipeline_mode = #tpu.pipeline_mode<synchronous>, transform_indices = @transform_6, window_bounds = array<i64: 16, 1>}, {transform_indices = @transform_7, window_bounds = array<i64: 1, 16, 1>}]} {
    %c0 = arith.constant 0 : index
    %c0_0 = arith.constant 0 : index
    %c0_1 = arith.constant 0 : index
    %0 = vector.load %arg1[%c0, %c0_0, %c0_1] : memref<1x4x16xf32, #tpu.memory_space<vmem>>, vector<1x4x16xf32>
    %1 = vector.shape_cast %0 : vector<1x4x16xf32> to vector<4x16xf32>
    %c0_2 = arith.constant 0 : index
    %c0_3 = arith.constant 0 : index
    %2 = vector.load %arg2[%c0_2, %c0_3] : memref<16x32xf32, #tpu.memory_space<vmem>>, vector<16x32xf32>
    %cst = arith.constant dense<0.000000e+00> : vector<4x32xf32>
    %3 = tpu.matmul %1, %2, %cst {dimension_numbers = #tpu.dot_dimension_numbers<[1], [0], [0], [1], [0, 0, 1, 1], [], []>} : vector<4x16xf32>, vector<16x32xf32>, vector<4x32xf32> -> vector<4x32xf32>
    %4 = vector.extract_strided_slice %3 {offsets = [0, 0], sizes = [4, 8], strides = [1, 1]} : vector<4x32xf32> to vector<4x8xf32>
    %c0_4 = arith.constant 0 : index
    %c0_5 = arith.constant 0 : index
    %5 = vector.load %arg9[%c0_4, %c0_5] : memref<32x8xf32, #tpu.memory_space<vmem>>, vector<4x8xf32>
    tpu.vector_store %arg9[%c0_4, %c0_5], %4 {strides = array<i32>} : memref<32x8xf32, #tpu.memory_space<vmem>>, vector<4x8xf32>,
    %6 = vector.extract_strided_slice %3 {offsets = [0, 8], sizes = [4, 8], strides = [1, 1]} : vector<4x32xf32> to vector<4x8xf32>
    %c4 = arith.constant 4 : index
    %c0_6 = arith.constant 0 : index
    %7 = vector.load %arg9[%c4, %c0_6] : memref<32x8xf32, #tpu.memory_space<vmem>>, vector<4x8xf32>
    tpu.vector_store %arg9[%c4, %c0_6], %6 {strides = array<i32>} : memref<32x8xf32, #tpu.memory_space<vmem>>, vector<4x8xf32>,
    %8 = vector.extract_strided_slice %3 {offsets = [0, 16], sizes = [4, 8], strides = [1, 1]} : vector<4x32xf32> to vector<4x8xf32>
    %c8 = arith.constant 8 : index
    %c0_7 = arith.constant 0 : index
    %9 = vector.load %arg9[%c8, %c0_7] : memref<32x8xf32, #tpu.memory_space<vmem>>, vector<4x8xf32>
    tpu.vector_store %arg9[%c8, %c0_7], %8 {strides = array<i32>} : memref<32x8xf32, #tpu.memory_space<vmem>>, vector<4x8xf32>,
    %10 = vector.extract_strided_slice %3 {offsets = [0, 24], sizes = [4, 8], strides = [1, 1]} : vector<4x32xf32> to vector<4x8xf32>
    %c12 = arith.constant 12 : index
    %c0_8 = arith.constant 0 : index
    %11 = vector.load %arg9[%c12, %c0_8] : memref<32x8xf32, #tpu.memory_space<vmem>>, vector<4x8xf32>
    tpu.vector_store %arg9[%c12, %c0_8], %10 {strides = array<i32>} : memref<32x8xf32, #tpu.memory_space<vmem>>, vector<4x8xf32>,
    %c0_9 = arith.constant 0 : index
    %c0_10 = arith.constant 0 : index
    %12 = vector.load %arg9[%c0_9, %c0_10] : memref<32x8xf32, #tpu.memory_space<vmem>>, vector<16x8xf32>
    %c0_11 = arith.constant 0 : index
    %c0_12 = arith.constant 0 : index
    %13 = vector.load %arg3[%c0_11, %c0_12] : memref<8x16xf32, #tpu.memory_space<vmem>>, vector<8x16xf32>
    %cst_13 = arith.constant dense<0.000000e+00> : vector<8x8xf32>
    %14 = tpu.matmul %13, %12, %cst_13 {dimension_numbers = #tpu.dot_dimension_numbers<[1], [0], [0], [1], [0, 0, 1, 1], [], []>} : vector<8x16xf32>, vector<16x8xf32>, vector<8x8xf32> -> vector<8x8xf32>
    %c0_14 = arith.constant 0 : index
    %c0_15 = arith.constant 0 : index
    %15 = vector.load %arg4[%c0_14, %c0_15] : memref<8x1xf32, #tpu.memory_space<vmem>>, vector<8x1xf32>
    %16 = vector.broadcast %15 : vector<8x1xf32> to vector<8x8xf32>
    %17 = arith.addf %14, %16 : vector<8x8xf32>
    %cst_16 = arith.constant 0.000000e+00 : f32
    %18 = vector.broadcast %cst_16 : f32 to vector<8x8xf32>
    %19 = arith.cmpf oge, %17, %18 : vector<8x8xf32>
    %cst_17 = arith.constant 2.000000e-01 : f32
    %20 = vector.broadcast %cst_17 : f32 to vector<8x8xf32>
    %21 = arith.mulf %20, %17 : vector<8x8xf32>
    %22 = arith.select %19, %17, %21 : vector<8x8xi1>, vector<8x8xf32>
    %c0_18 = arith.constant 0 : index
    %c0_19 = arith.constant 0 : index
    %23 = vector.load %arg5[%c0_18, %c0_19] : memref<8x16xf32, #tpu.memory_space<vmem>>, vector<8x16xf32>
    %cst_20 = arith.constant dense<0.000000e+00> : vector<8x16xf32>
    %24 = tpu.matmul %22, %23, %cst_20 {dimension_numbers = #tpu.dot_dimension_numbers<[1], [0], [0], [1], [0, 0, 1, 1], [], []>} : vector<8x8xf32>, vector<8x16xf32>, vector<8x16xf32> -> vector<8x16xf32>
    %25 = vector.extract_strided_slice %24 {offsets = [0, 0], sizes = [8, 4], strides = [1, 1]} : vector<8x16xf32> to vector<8x4xf32>
    %c0_21 = arith.constant 0 : index
    %c0_22 = arith.constant 0 : index
    %26 = vector.load %arg9[%c0_21, %c0_22] : memref<32x8xf32, #tpu.memory_space<vmem>>, vector<8x4xf32>
    tpu.vector_store %arg9[%c0_21, %c0_22], %25 {strides = array<i32>} : memref<32x8xf32, #tpu.memory_space<vmem>>, vector<8x4xf32>,
    %27 = vector.extract_strided_slice %24 {offsets = [0, 4], sizes = [8, 4], strides = [1, 1]} : vector<8x16xf32> to vector<8x4xf32>
    %c8_23 = arith.constant 8 : index
    %c0_24 = arith.constant 0 : index
    %28 = vector.load %arg9[%c8_23, %c0_24] : memref<32x8xf32, #tpu.memory_space<vmem>>, vector<8x4xf32>
    tpu.vector_store %arg9[%c8_23, %c0_24], %27 {strides = array<i32>} : memref<32x8xf32, #tpu.memory_space<vmem>>, vector<8x4xf32>,
    %29 = vector.extract_strided_slice %24 {offsets = [0, 8], sizes = [8, 4], strides = [1, 1]} : vector<8x16xf32> to vector<8x4xf32>
    %c16 = arith.constant 16 : index
    %c0_25 = arith.constant 0 : index
    %30 = vector.load %arg9[%c16, %c0_25] : memref<32x8xf32, #tpu.memory_space<vmem>>, vector<8x4xf32>
    tpu.vector_store %arg9[%c16, %c0_25], %29 {strides = array<i32>} : memref<32x8xf32, #tpu.memory_space<vmem>>, vector<8x4xf32>,
    %31 = vector.extract_strided_slice %24 {offsets = [0, 12], sizes = [8, 4], strides = [1, 1]} : vector<8x16xf32> to vector<8x4xf32>
    %c24 = arith.constant 24 : index
    %c0_26 = arith.constant 0 : index
    %32 = vector.load %arg9[%c24, %c0_26] : memref<32x8xf32, #tpu.memory_space<vmem>>, vector<8x4xf32>
    tpu.vector_store %arg9[%c24, %c0_26], %31 {strides = array<i32>} : memref<32x8xf32, #tpu.memory_space<vmem>>, vector<8x4xf32>,
    %c0_27 = arith.constant 0 : index
    %c0_28 = arith.constant 0 : index
    %33 = vector.load %arg9[%c0_27, %c0_28] : memref<32x8xf32, #tpu.memory_space<vmem>>, vector<32x4xf32>
    %c0_29 = arith.constant 0 : index
    %c0_30 = arith.constant 0 : index
    %34 = vector.load %arg6[%c0_29, %c0_30] : memref<16x32xf32, #tpu.memory_space<vmem>>, vector<16x32xf32>
    %cst_31 = arith.constant dense<0.000000e+00> : vector<16x4xf32>
    %35 = tpu.matmul %34, %33, %cst_31 {dimension_numbers = #tpu.dot_dimension_numbers<[1], [0], [0], [1], [0, 0, 1, 1], [], []>} : vector<16x32xf32>, vector<32x4xf32>, vector<16x4xf32> -> vector<16x4xf32>
    %c0_32 = arith.constant 0 : index
    %c0_33 = arith.constant 0 : index
    %36 = vector.load %arg7[%c0_32, %c0_33] : memref<16x1xf32, #tpu.memory_space<vmem>>, vector<16x1xf32>
    %37 = vector.broadcast %36 : vector<16x1xf32> to vector<16x4xf32>
    %38 = arith.addf %35, %37 : vector<16x4xf32>
    %cst_34 = arith.constant 0.000000e+00 : f32
    %39 = vector.broadcast %cst_34 : f32 to vector<16x4xf32>
    %40 = arith.cmpf oge, %38, %39 : vector<16x4xf32>
    %cst_35 = arith.constant 2.000000e-01 : f32
    %41 = vector.broadcast %cst_35 : f32 to vector<16x4xf32>
    %42 = arith.mulf %41, %38 : vector<16x4xf32>
    %43 = arith.select %40, %38, %42 : vector<16x4xi1>, vector<16x4xf32>
    %cst_36 = arith.constant dense<0xFF800000> : vector<16xf32>
    %44 = vector.multi_reduction <maximumf>, %43, %cst_36 [1] : vector<16x4xf32> to vector<16xf32>
    %45 = vector.shape_cast %44 : vector<16xf32> to vector<16x1xf32>
    %c0_37 = arith.constant 0 : index
    %c0_38 = arith.constant 0 : index
    %c0_39 = arith.constant 0 : index
    %46 = vector.load %arg8[%c0_37, %c0_38, %c0_39] : memref<1x16x1xf32, #tpu.memory_space<vmem>>, vector<1x16x1xf32>
    %47 = vector.shape_cast %46 : vector<1x16x1xf32> to vector<16x1xf32>
    %48 = vector.shape_cast %45 : vector<16x1xf32> to vector<1x16x1xf32>
    tpu.vector_store %arg8[%c0_37, %c0_38, %c0_39], %48 {strides = array<i32>} : memref<1x16x1xf32, #tpu.memory_space<vmem>>, vector<1x16x1xf32>,
    return
  }
  func.func @transform_0(%arg0: i32) -> (i32, i32, i32) {
    %c0_i32 = arith.constant 0 : i32
    %c0_i32_0 = arith.constant 0 : i32
    %c0_i32_1 = arith.constant 0 : i32
    return %arg0, %c0_i32, %c0_i32_0 : i32, i32, i32
  }
  func.func @transform_1(%arg0: i32) -> (i32, i32) {
    %c0_i32 = arith.constant 0 : i32
    %c0_i32_0 = arith.constant 0 : i32
    %c0_i32_1 = arith.constant 0 : i32
    return %c0_i32, %c0_i32_0 : i32, i32
  }
  func.func @transform_2(%arg0: i32) -> (i32, i32) {
    %c0_i32 = arith.constant 0 : i32
    %c0_i32_0 = arith.constant 0 : i32
    %c0_i32_1 = arith.constant 0 : i32
    return %c0_i32, %c0_i32_0 : i32, i32
  }
  func.func @transform_3(%arg0: i32) -> (i32, i32) {
    %c0_i32 = arith.constant 0 : i32
    %c0_i32_0 = arith.constant 0 : i32
    %c0_i32_1 = arith.constant 0 : i32
    return %c0_i32, %c0_i32_0 : i32, i32
  }
  func.func @transform_4(%arg0: i32) -> (i32, i32) {
    %c0_i32 = arith.constant 0 : i32
    %c0_i32_0 = arith.constant 0 : i32
    %c0_i32_1 = arith.constant 0 : i32
    return %c0_i32, %c0_i32_0 : i32, i32
  }
  func.func @transform_5(%arg0: i32) -> (i32, i32) {
    %c0_i32 = arith.constant 0 : i32
    %c0_i32_0 = arith.constant 0 : i32
    %c0_i32_1 = arith.constant 0 : i32
    return %c0_i32, %c0_i32_0 : i32, i32
  }
  func.func @transform_6(%arg0: i32) -> (i32, i32) {
    %c0_i32 = arith.constant 0 : i32
    %c0_i32_0 = arith.constant 0 : i32
    %c0_i32_1 = arith.constant 0 : i32
    return %c0_i32, %c0_i32_0 : i32, i32
  }
  func.func @transform_7(%arg0: i32) -> (i32, i32, i32) {
    %c0_i32 = arith.constant 0 : i32
    %c0_i32_0 = arith.constant 0 : i32
    %c0_i32_1 = arith.constant 0 : i32
    return %arg0, %c0_i32, %c0_i32_0 : i32, i32, i32
  }
}

</mosaic_0001>

<bundles_post_ra>
// kernel: a_call__.1
= control target key start
LH: loop header
LB: loop body
LE: loop exit
PB: predicated region body
PF: predicated region fallthrough
CT: control target
= control target key end

     0   :  { %12 = vsyncpa [#allocation4], 0  ;;  %s1558_s0 = inlined_call_operand.hbm [shape: f32[2,4,16], index: 0, kind: input, shape index: {}]   ;;  %s1559_s1 = inlined_call_operand.hbm [shape: f32[16,32], index: 1, kind: input, shape index: {}]   ;;  %s1560_s2 = inlined_call_operand.hbm [shape: f32[8,16], index: 2, kind: input, shape index: {}]   ;;  %s1561_s3 = inlined_call_operand.hbm [shape: f32[8,1], index: 3, kind: input, shape index: {}]   ;;  %s1562_s4 = inlined_call_operand.hbm [shape: f32[8,16], index: 4, kind: input, shape index: {}]   ;;  %s1563_s5 = inlined_call_operand.hbm [shape: f32[16,32], index: 5, kind: input, shape index: {}]   ;;  %s1564_s6 = inlined_call_operand.hbm [shape: f32[16,1], index: 6, kind: input, shape index: {}]   ;;  %s1565_s7 = inlined_call_operand.vmem [shape: f32[2,16,1], index: 7, kind: output, shape index: {}]  }
   0x1   :  { %14 = vsyncpa [#allocation4 + $0x1], 0 }
   0x2   :  { %15 = vsyncpa [#allocation6], 0 }
   0x3   :  { %16 = vsyncpa [#allocation9], 0 }
   0x4   :  { %17 = vsyncpa [#allocation12], 0  ;;  %s1357_s24 = smov 0   ;;  %s1359_s25 = smov 0  }
   0x5   :  { %s1361_s26 = smov 0   ;;  %s1363_s27 = smov 0  }
   0x6 LB: > { %s1300_s28 = smov [#allocation5]   ;;  %s1378_s30 = sadd.s32 4294967295, %s1298_s27   ;;  %s1298_s27 = sphi %s1363_s27, %s1586_s27   ;;  %s1294_s26 = sphi %s1361_s26, %s1585_s26   ;;  %s1290_s25 = sphi %s1359_s25, %s1584_s25   ;;  %s1286_s24 = sphi %s1357_s24, %s1583_s24  }
   0x7   : > { %s218_s29 = sshll.u32 %s1300_s28, 4  ;;  %p884_p0 = scmp.ge.s32.totalorder %s1298_s27, 1  ;;  %s219_s29 = int_to_ptr.vmem [resolvable:$true] %s218_s29 }
   0x8   : > { %p1566_p1 = scmp.eq.s32.totalorder %s1378_s30, 0  ;;  %p206_p2 = scmp.lt.s32.totalorder %s1298_s27, 3 }
   0x9   : > { %s1301_s9 = smov [#allocation8]   ;;  %s1302_s12 = smov [#allocation11]  }
   0xa   : > { %p1383_p3 = pnand %p884_p0, %p206_p2  ;;  %s243_s10 = sshll.u32 %s1301_s9, 4  ;;  %s244_s10 = int_to_ptr.vmem [resolvable:$true] %s243_s10 }
   0xb   : > { %s264_s13 = sshll.u32 %s1302_s12, 4  ;;  %s1079_s15 = scalar_lea.vmem %s219_s29, 256  ;;  %s1395_s13 = int_to_ptr.vmem [resolvable:$true] %s264_s13 }
   0xc   : > { %s1569_s8 = scalar_select %p1383_p3, 1, 0 }
   0xd   : > { %p982_p4 = pneg %p1383_p3  ;;  %p1080_p7 = scmp.ne.s32.totalorder %s219_s29, %s1079_s15 }
   0xe   : > { %p1087_p10 = scmp.lt.s32.totalorder %s219_s29, %s219_s29  ;;  %p1088_p11 = scmp.lt.s32.totalorder %s1079_s15, %s1079_s15 }
   0xf   : > { %p1391_p5 = pnand %p982_p4, %p1566_p1 }
  0x10   : > { %p1089_p12 = por %p1088_p11, %p1087_p10 }
  0x11   : > { %p1399_p6 = pneg %p1391_p5 }
  0x13   : > { %p1082_p8 = pnand %p1080_p7, %p1399_p6 }
  0x15   : > { %p1083_p9 = pneg %p1082_p8 }
  0x17   : > { %p1090_p13 = pnand %p1089_p12, %p1083_p9 }
  0x19   : > { %1093 = shalt.err (!%p1090_p13)
}
  0x1a   : > { %s1303_s16 = smov 128   ;;  %s1304_s17 = smov 8  }
  0x1b   : > { %985 = dma.hbm_to_vmem [thread:$0]  (!%p1391_p5), %s1559_s1, 256, %s219_s29, [#allocation6], %s1303_s16, %s1303_s16, %s1304_s17  }
  0x1c   : > { %s1105_s20 = scalar_lea.vmem %s244_s10, 128  ;;  %p1113_p7 = scmp.lt.s32.totalorder %s244_s10, %s244_s10 }
  0x1d   : > { %p1106_p0 = scmp.ne.s32.totalorder %s244_s10, %s1105_s20  ;;  %p1114_p8 = scmp.lt.s32.totalorder %s1105_s20, %s1105_s20 }
  0x1f   : > { %p1108_p2 = pnand %p1106_p0, %p1399_p6  ;;  %p1115_p9 = por %p1114_p8, %p1113_p7 }
  0x21   : > { %p1109_p4 = pneg %p1108_p2 }
  0x23   : > { %p1116_p10 = pnand %p1115_p9, %p1109_p4 }
  0x25   : > { %1119 = shalt.err (!%p1116_p10)
}
  0x26   : > { %991 = dma.hbm_to_vmem [thread:$0]  (!%p1391_p5), %s1561_s3, 128, %s244_s10, [#allocation9]  }
  0x27   : > { %s1131_s23 = scalar_lea.vmem %s1395_s13, 256  ;;  %p1139_p0 = scmp.lt.s32.totalorder %s1395_s13, %s1395_s13 }
  0x28   : > { %p1132_p11 = scmp.ne.s32.totalorder %s1395_s13, %s1131_s23  ;;  %p1140_p2 = scmp.lt.s32.totalorder %s1131_s23, %s1131_s23 }
  0x2a   : > { %p1134_p12 = pnand %p1132_p11, %p1399_p6  ;;  %p1141_p4 = por %p1140_p2, %p1139_p0 }
  0x2c   : > { %p1135_p13 = pneg %p1134_p12 }
  0x2e   : > { %p1142_p7 = pnand %p1141_p4, %p1135_p13 }
  0x30   : > { %1145 = shalt.err (!%p1142_p7)
}
  0x31   : > { %997 = dma.hbm_to_vmem [thread:$0]  (!%p1391_p5), %s1563_s5, 256, %s1395_s13, [#allocation12], %s1303_s16, %s1303_s16, %s1304_s17  }
  0x32   : > { %s1305_s9 = smov [#allocation7]   ;;  %s1306_s12 = smov [#allocation10]  }
  0x33   : > { %s232_s10 = sshll.u32 %s1305_s9, 4  ;;  %s254_s15 = sshll.u32 %s1306_s12, 4  ;;  %s233_s10 = int_to_ptr.vmem [resolvable:$true] %s232_s10  ;;  %s255_s15 = int_to_ptr.vmem [resolvable:$true] %s254_s15 }
  0x34   : > { %s1157_s18 = scalar_lea.vmem %s233_s10, 128  ;;  %p1165_p11 = scmp.lt.s32.totalorder %s233_s10, %s233_s10 }
  0x35   : > { %p1158_p8 = scmp.ne.s32.totalorder %s233_s10, %s1157_s18  ;;  %p1166_p12 = scmp.lt.s32.totalorder %s1157_s18, %s1157_s18 }
  0x37   : > { %p1160_p9 = pnand %p1158_p8, %p1399_p6  ;;  %p1167_p13 = por %p1166_p12, %p1165_p11 }
  0x39   : > { %p1161_p10 = pneg %p1160_p9 }
  0x3b   : > { %p1168_p0 = pnand %p1167_p13, %p1161_p10 }
  0x3d   : > { %1171 = shalt.err (!%p1168_p0)
}
  0x3e   : > { %988 = dma.hbm_to_vmem [thread:$0]  (!%p1391_p5), %s1560_s2, 128, %s233_s10, [#allocation6]  }
  0x3f   : > { %s1183_s13 = scalar_lea.vmem %s255_s15, 128  ;;  %p1191_p8 = scmp.lt.s32.totalorder %s255_s15, %s255_s15 }
  0x40   : > { %p1184_p2 = scmp.ne.s32.totalorder %s255_s15, %s1183_s13  ;;  %p1192_p9 = scmp.lt.s32.totalorder %s1183_s13, %s1183_s13 }
  0x42   : > { %p1186_p4 = pnand %p1184_p2, %p1399_p6  ;;  %p1193_p1 = por %p1192_p9, %p1191_p8 }
  0x44   : > { %p1187_p7 = pneg %p1186_p4 }
  0x46   : > { %p1194_p3 = pnand %p1193_p1, %p1187_p7 }
  0x48   : > { %1197 = shalt.err (!%p1194_p3)
}
  0x49   : > { %994 = dma.hbm_to_vmem [thread:$0]  (!%p1391_p5), %s1562_s4, 128, %s255_s15, [#allocation9]  }
  0x4a   : > { %s1307_s23 = smov [#allocation13]  }
  0x4b   : > { %s277_s28 = sshll.u32 %s1307_s23, 4  ;;  %s278_s28 = int_to_ptr.vmem [resolvable:$true] %s277_s28 }
  0x4c   : > { %s1209_s29 = scalar_lea.vmem %s278_s28, 256  ;;  %p1217_p13 = scmp.lt.s32.totalorder %s278_s28, %s278_s28 }
  0x4d   : > { %p1210_p10 = scmp.ne.s32.totalorder %s278_s28, %s1209_s29  ;;  %p1218_p0 = scmp.lt.s32.totalorder %s1209_s29, %s1209_s29 }
  0x4f   : > { %p1212_p11 = pnand %p1210_p10, %p1399_p6  ;;  %p1219_p2 = por %p1218_p0, %p1217_p13 }
  0x51   : > { %p1213_p12 = pneg %p1212_p11 }
  0x53   : > { %p1220_p1 = pnand %p1219_p2, %p1213_p12 }
  0x55   : > { %1223 = shalt.err (!%p1220_p1)
}
  0x56   : > { %1000 = dma.hbm_to_vmem [thread:$0]  (!%p1391_p5), %s1564_s6, 256, %s278_s28, [#allocation12], %s1303_s16, %s1303_s16, %s1304_s17  }
  0x57   : > { %s1460_s11 = sadd.s32 1, %s1298_s27   ;;  %s30_s14 = sadd.s32 1, %s1294_s26 }
  0x58   : > { %s27_s12 = ssub.s32 %s1298_s27, %s1460_s11  ;;  %p37_p3 = scmp.ne.s32.totalorder %s1294_s26, %s1290_s25 }
  0x59   : > { %p28_p6 = scmp.eq.s32.totalorder %s27_s12, 0  ;;  %p38_p4 = scmp.eq.s32.totalorder %s1298_s27, 0 }
  0x5a   : > { %p43_p7 = scmp.ne.s32.totalorder %s1290_s25, %s1286_s24  ;;  %p1011_p8 = scmp.lt.s32.totalorder %s1298_s27, 2 }
  0x5b   : > { %s1472_s15 = scalar_select %p28_p6, %s1294_s26, %s30_s14  }
  0x5c   : > { %p39_p9 = por %p38_p4, %p37_p3  ;;  %p1572_p10 = scmp.eq.s32.totalorder %s1378_s30, 0 }
  0x5d   : > { %s291_s19 = sand.u32 1, %s1294_s26   ;;  %s893_s16 = sshll.u32 %s1298_s27, 6 }
  0x5e   : > { %p1476_p11 = por %p1572_p10, %p43_p7  ;;  %s892_s17 = sshll.u32 %s291_s19, 2 }
  0x5f   : > { %s1485_s21 = scalar_lea.hbm %s1558_s0, %s893_s16  ;;  %s295_s24 = scalar_lea.vmem [#allocation3], %s892_s17 }
  0x60   : > { %s1573_s18 = scalar_select %p1476_p11, 1, 0 }
  0x61   : > { %s302_s22 = sshll.u32 %s295_s24, 4  ;;  %p1487_p5 = pnand %p1011_p8, %p39_p9  ;;  %s303_s22 = int_to_ptr.vmem [resolvable:$true] %s302_s22 }
  0x62   : > { %s292_s28 = scalar_lea.sflag [#allocation4], %s291_s19  ;;  %s1224_s29 = scalar_lea.hbm %s1485_s21, 64 }
  0x63   : > { %p1225_p12 = scmp.ne.s32.totalorder %s1485_s21, %s1224_s29  ;;  %p1226_p13 = pneg %p1487_p5 }
  0x64   : > { %s1229_s10 = scalar_lea.hbm %s1558_s0, 128  ;;  %p1230_p1 = scmp.lt.s32.totalorder %s1485_s21, %s1558_s0 }
  0x65   : > { %p1227_p0 = pnand %p1226_p13, %p1225_p12  ;;  %p1231_p3 = scmp.lt.s32.totalorder %s1229_s10, %s1224_s29 }
  0x67   : > { %p1228_p2 = pneg %p1227_p0  ;;  %p1232_p6 = por %p1231_p3, %p1230_p1 }
  0x69   : > { %p1233_p4 = pnand %p1232_p6, %p1228_p2 }
  0x6b   : > { %1236 = shalt.err (!%p1233_p4)
}
  0x6c   : > { %s1237_s16 = scalar_lea.vmem %s303_s22, 64  ;;  %s1308_s19 = smov [#allocation3]  }
  0x6d   : > { %p1238_p7 = scmp.ne.s32.totalorder %s303_s22, %s1237_s16  ;;  %s1242_s17 = sshll.u32 %s1308_s19, 4  ;;  %s1243_s17 = int_to_ptr.vmem [resolvable:$false] %s1242_s17 }
  0x6e   : > { %s1244_s20 = scalar_lea.vmem %s1243_s17, 128  ;;  %p1245_p10 = scmp.lt.s32.totalorder %s303_s22, %s1243_s17 }
  0x6f   : > { %p1240_p8 = pnand %p1238_p7, %p1226_p13  ;;  %p1246_p12 = scmp.lt.s32.totalorder %s1244_s20, %s1237_s16 }
  0x71   : > { %p1241_p9 = pneg %p1240_p8  ;;  %p1247_p0 = por %p1246_p12, %p1245_p10 }
  0x73   : > { %p1248_p11 = pnand %p1247_p0, %p1241_p9 }
  0x75   : > { %1251 = shalt.err (!%p1248_p11)
}
  0x76   : > { %1004 = dma.hbm_to_vmem [thread:$0]  (!%p1487_p5), %s1485_s21, 64, %s303_s22, %s292_s28  }
  0x77   : > { %p1575_p2 = scmp.ne.s32.totalorder %s1569_s8, 0 }
  0x78   : > { %s313_s13 = sand.u32 (!%p1575_p2), 1, %s1290_s25   ;;  %p1576_p13 = scmp.ne.s32.totalorder (!%p1575_p2), %s1573_s18, 0 }
  0x79   : > { %311 = sbr.rel (%p1575_p2) target bundleno = 1328 (0x530), region = 48  ;;  %s895_s24 = sshll.u32 (!%p1575_p2), %s313_s13, 2 }
  0x7a   : > { %s314_s29 = scalar_lea.sflag (!%p1575_p2), [#allocation4], %s313_s13  ;;  %s317_s27 = scalar_lea.vmem (!%p1575_p2), [#allocation3], %s895_s24 }
  0x7e   : > { %1269 = dma.done.wait (%p1576_p13), %s314_s29, 64  }
  0x7f   : > { %1271 = vsyncadd (%p1576_p13), %s314_s29, 4294967232  ;;  %p1577_p11 = scmp.eq.s32.totalorder %s1378_s30, 0 }
  0x81   : > { %1273 = dma.done.wait (%p1577_p11), [#allocation6], 384   ;;  %p1578_p1 = pmov %p1577_p11 }
  0x83   : > { %1275 = vsyncadd (%p1578_p1), [#allocation6], 4294966912  ;;  %p1579_p5 = pmov %p1578_p1 }
  0x84   : > { %p1580_p3 = pmov %p1578_p1 }
  0x85   : > { %1277 = dma.done.wait (%p1579_p5), [#allocation9], 256  }
  0x86   : > { %1279 = vsyncadd (%p1580_p3), [#allocation9], 4294967040  ;;  %p1581_p6 = pmov %p1578_p1 }
  0x87   : > { %p1582_p4 = pmov %p1578_p1 }
  0x88   : > { %1281 = dma.done.wait (%p1581_p6), [#allocation12], 512  }
  0x89   : > { %1283 = vsyncadd (%p1582_p4), [#allocation12], 4294966784  ;;  %v1309_v0 = vmov 0.0   ;;  %vm1310_vm0 = vmmov 0   ;;  %v379_v1 = vld [vmem:[#allocation5 + $0x8] sm:$0xff]  ;;  %v378_v2 = vld [vmem:[#allocation5] sm:$0xff] }
  0x8a   : > { %926 = vmatprep.subr.mxu0 %v1309_v0  ;;  %930 = vmatprep.mubr.msk.f32.mxu0 %vm1310_vm0, %v1309_v0  ;;  %v377_v3 = vld [vmem:[%s317_s27] sm:$0xf]  ;;  %vm380_vm1 = vcmask 130048   ;;  %vm454_vm2 = vcmask 60416   ;;  %s1311_s8 = smov 120   ;;  %s1312_s18 = smov 112  }
  0x8b   : > { %933 = vmatprep.subr.mxu1 %v1309_v0  ;;  %937 = vmatprep.mubr.msk.f32.mxu1 %vm1310_vm0, %v1309_v0  ;;  %v472_v6 = vld [vmem:[#allocation8] sm:$0xff]  ;;  %v1313_v7 = vmov 0   ;;  %s1314_s21 = smov 104   ;;  %v471_v12 = vld [vmem:[#allocation7] sm:$0xff]  ;;  %v554_v14 = vld [vmem:[#allocation10] sm:$0xff]  ;;  %vm555_vm4 = vcmask 64512  }
  0x8c   : > { %927 = vmatpush3.msra.mxu0 %v379_v1  ;;  %1066 = vset.pattern.permute.xlu1 %v1313_v7  ;;  %vm629_vm5 = vcmask 31744   ;;  %s1315_s22 = smov 116   ;;  %v650_v23 = vld [vmem:[#allocation13] sm:$0xff]  ;;  %v648_v24 = vld [vmem:[#allocation11] sm:$0xff]  ;;  %vm662_vm6 = vcmask 261120   ;;  %s1316_s23 = smov 124  }
  0x8d   : > { %928 = vmatprep.subr.mxu0 %v1309_v0  ;;  %1067 = vset.pattern.permute.xlu0 %v1313_v7  ;;  %v651_v25 = vld [vmem:[#allocation13 + $0x8] sm:$0xff]  ;;  %v649_v33 = vld [vmem:[#allocation11 + $0x8] sm:$0xff]  ;;  %p372_p7 = scmp.lt.s32.totalorder %s1378_s30, 1  ;;  %vm756_vm9 = vcmask 7168  }
  0x8e   : > { %929 = vmatpush3.msra.mxu0 %v378_v2 }
  0x8f   : > { %931 = vmatmul.mubr.msk.f32.vlgmr.msra.gmra.mxu0 %vm380_vm1, %v377_v3  ;;  %940 = vmatprep.subr.mxu0 %v1309_v0  ;;  %s1588_s30 = smov (!%p372_p7, %s1378_s30), 1 }
  0x90   : > { %942 = vmatprep.mubr.msk.f32.mxu0 %vm1310_vm0, %v1309_v0  ;;  %941 = vmatpush3.msra.mxu0 %v554_v14  ;;  %s911_s28 = sshll.u32 %s1588_s30, 4 }
  0x91   : > { %s376_s14 = scalar_lea.vmem %s1565_s7, %s911_s28 }
 0x14f   : > { %v450_v4 = vpop.f32.mrf.mxu0 }
 0x150   : > { %455 = vst.msk [vmem:[#allocation2] sm:$0xf] %vm454_vm2, %v450_v4  ;;  %457 = vrot.lane.b32.xlu1 %v450_v4, %s1311_s8  ;;  %461 = vrot.lane.b32.xlu0 %v450_v4, %s1312_s18 }
 0x151   : > { %v932_v5 = vpop.f32.mrf.mxu0 }
 0x154   : > { %465 = vrot.lane.b32.xlu0 %v450_v4, %s1314_s21  ;;  %475 = vperm.xlu1 %1066, %v472_v6  }
 0x1c2   : > { %v458_v8 = vpop.permute.xlu1 %457  ;;  %v462_v9 = vpop.permute.xlu0 %461 }
 0x1c3   : > { %460 = vst.msk [vmem:[#allocation2 + $0x4] sm:$0xf] %vm454_vm2, %v458_v8  ;;  %464 = vst.msk [vmem:[#allocation2 + $0x8] sm:$0xf] %vm454_vm2, %v462_v9 }
 0x1c6   : > { %v466_v10 = vpop.permute.xlu0 %465 }
 0x1c7   : > { %468 = vst.msk [vmem:[#allocation2 + $0xc] sm:$0xf] %vm454_vm2, %v466_v10 }
 0x1ca   : > { %v469_v13 = vld [vmem:[#allocation2] sm:$0xff] }
 0x1ce   : > { %v470_v11 = vld [vmem:[#allocation2 + $0x8] sm:$0xff] }
 0x1cf   : > { %934 = vmatpush3.msra.mxu1 %v470_v11  ;;  %v476_v15 = vpop.permute.xlu1 %475 }
 0x1d0   : > { %935 = vmatprep.subr.mxu1 %v1309_v0 }
 0x1d1   : > { %936 = vmatpush3.msra.mxu1 %v469_v13 }
 0x1d2   : > { %938 = vmatmul.mubr.msk.f32.vlgmr.msra.gmra.mxu1 %vm380_vm1, %v471_v12 }
 0x1d3   : > { %953 = vmatprep.mubr.msk.f32.mxu1 %vm662_vm6, %v648_v24 }
 0x292   : > { %v547_v16 = vpop.f32.mrf.mxu1 }
 0x293   : > { %v548_v17 = vadd.f32 %v547_v16, %v476_v15 }
 0x294   : > { %v939_v18 = vpop.f32.mrf.mxu1 }
 0x295   : > { %vm551_vm3 = vcmp.ge.f32.partialorder %v548_v17, 0.0  ;;  %v552_v19 = vmul.f32 0.2, %v548_v17 }
 0x297   : > { %v553_v20 = vsel %vm551_vm3, %v548_v17, %v552_v19 }
 0x298   : > { %943 = vmatmul.mubr.msk.f32.vlgmr.msra.gmra.mxu0 %vm555_vm4, %v553_v20 }
 0x358   : > { %v625_v21 = vpop.f32.mrf.mxu0 }
 0x359   : > { %630 = vst.msk [vmem:[#allocation2] sm:$0xff] %vm629_vm5, %v625_v21  ;;  %636 = vrot.lane.b32.xlu1 %v625_v21, %s1311_s8  ;;  %640 = vrot.lane.b32.xlu0 %v625_v21, %s1315_s22 }
 0x35a   : > { %v944_v22 = vpop.f32.mrf.mxu0 }
 0x35d   : > { %654 = vperm.xlu1 %1066, %v650_v23   ;;  %632 = vrot.lane.b32.xlu0 %v625_v21, %s1316_s23 }
 0x360   : > { %v644_v32 = vld [vmem:[#allocation2] sm:$0xff] }
 0x361   : > { %659 = vperm.xlu0 %1067, %v651_v25  }
 0x3cb   : > { %v637_v26 = vpop.permute.xlu1 %636  ;;  %v641_v27 = vpop.permute.xlu0 %640 }
 0x3cc   : > { %639 = vst.msk [vmem:[#allocation2 + $0x10] sm:$0xff] %vm629_vm5, %v637_v26  ;;  %643 = vst.msk [vmem:[#allocation2 + $0x18] sm:$0xff] %vm629_vm5, %v641_v27 }
 0x3cf   : > { %v633_v28 = vpop.permute.xlu0 %632 }
 0x3d0   : > { %635 = vst.msk [vmem:[#allocation2 + $0x8] sm:$0xff] %vm629_vm5, %v633_v28 }
 0x3d3   : > { %v647_v29 = vld [vmem:[#allocation2 + $0x18] sm:$0xff]  ;;  %v646_v30 = vld [vmem:[#allocation2 + $0x10] sm:$0xff] }
 0x3d4   : > { %945 = vmatprep.subr.mxu1 %v647_v29 }
 0x3d5   : > { %946 = vmatpush3.msra.mxu1 %v647_v29 }
 0x3d6   : > { %947 = vmatprep.subr.mxu1 %v646_v30 }
 0x3d7   : > { %948 = vmatpush3.msra.mxu1 %v646_v30  ;;  %v645_v31 = vld [vmem:[#allocation2 + $0x8] sm:$0xff] }
 0x3d8   : > { %949 = vmatprep.subr.mxu1 %v645_v31  ;;  %v655_v37 = vpop.permute.xlu1 %654 }
 0x3d9   : > { %950 = vmatpush3.msra.mxu1 %v645_v31 }
 0x3da   : > { %951 = vmatprep.subr.mxu1 %v644_v32 }
 0x3db   : > { %952 = vmatpush3.msra.mxu1 %v644_v32 }
 0x3dc   : > { %954 = vmatmul.mubr.msk.f32.vlgmr.msra.gmra.mxu1 %vm662_vm6, %v649_v33  ;;  %v660_v34 = vpop.permute.xlu0 %659 }
 0x49c   : > { %v955_v35 = vpop.f32.mrf.mxu1 }
 0x49d   : > { %v741_v36 = vadd.f32 %v955_v35, %v660_v34 }
 0x49e   : > { %v735_v38 = vpop.f32.mrf.mxu1 }
 0x49f   : > { %v747_v39 = vmul.f32 0.2, %v741_v36  ;;  %v736_v40 = vadd.f32 %v735_v38, %v655_v37  ;;  %vm745_vm7 = vcmp.ge.f32.partialorder %v741_v36, 0.0 }
 0x4a1   : > { %v746_v41 = vmul.f32 0.2, %v736_v40  ;;  %v749_v42 = vsel %vm745_vm7, %v741_v36, %v747_v39  ;;  %vm744_vm8 = vcmp.ge.f32.partialorder %v736_v40, 0.0 }
 0x4a2   : > { %v753_v43 = vsel %vm629_vm5, %v749_v42, -inf }
 0x4a3   : > { %754 = vmax.xlane.f32.xlu0 %v753_v43  ;;  %v748_v44 = vsel %vm744_vm8, %v736_v40, %v746_v41 }
 0x4a4   : > { %v750_v45 = vsel %vm629_vm5, %v748_v44, -inf }
 0x4a5   : > { %751 = vmax.xlane.f32.xlu1 %v750_v45 }
 0x52c   : > { %v755_v46 = vpop.xlane.xlu0 %754 }
 0x52d   : > { %758 = vst.msk [vmem:[%s376_s14 + $0x8] sm:$0xff] %vm756_vm9, %v755_v46 }
 0x52e   : > { %v752_v47 = vpop.xlane.xlu1 %751 }
 0x52f   : > { %757 = vst.msk [vmem:[%s376_s14] sm:$0xff] %vm756_vm9, %v752_v47 }
 0x530 PF: > { %p20_p8 = scmp.ge.s32.totalorder %s1460_s11, 4   ;;  %s1583_s24 = smov %s1290_s25 }
 0x531   : > { %s1584_s25 = smov %s1294_s26  ;;  %s1585_s26 = smov %s1472_s15 }
 0x532   : > { %s1586_s27 = smov %s1460_s11  ;;  %22 = sbr.rel (!%p20_p8) target bundleno = 6 (0x6), region = 112 }
 0x537   :  { %780 = vsyncpa [#allocation4], 1 }
 0x538   :  { %782 = vsyncpa [#allocation4 + $0x1], 1 }
 0x539   :  { %783 = vsyncpa [#allocation6], 1 }
 0x53a   :  { %784 = vsyncpa [#allocation9], 1 }
 0x53b   :  { %785 = vsyncpa [#allocation12], 1 }

</bundles_post_ra>
